<compile_context>
chip_gen: v6e
topology: v6e:2x2x1
jax: 0.10.0
libtpu: 0.0.40
codegen_flags: <defaults>
</compile_context>

<pallas_src>
import jax
import jax.numpy as jnp
from jax.experimental import pallas as pl
from jax.experimental.pallas import tpu as pltpu

# Module hyper-parameters (PyTorch defaults: Nfeat=10, Nl=10, Nbands=46, Nw=250).
# Nfeat/Nbands/Nw match the module; a smaller Nl + small batch keep the demo quick.
NFEAT = 10
NL = 4
NBANDS = 46
NW = 250
BN_EPS = 1e-5          # PyTorch BatchNorm1d default eps

# Lane-dense padded sizes (last dim multiple of 128).
NFEAT_PAD = 128
NW_PAD = 256
NBANDS_PAD = 128

MATMUL_DTYPE = jnp.bfloat16   # MXU-native dtype; accumulation is f32.


def _round_up(n, m):
    return (n + m - 1) // m * m


def decoder_kernel(x_ref, w0_ref, b0_ref, w_ref, b_ref, wl_ref, bl_ref, out_ref):
    # First Linear: (BM, NFEAT_PAD) @ (NFEAT_PAD, NW_PAD).  Zero-padded feature
    # columns / weight rows contribute nothing, so this is exact.
    h = jnp.dot(x_ref[...].astype(MATMUL_DTYPE), w0_ref[...],
                preferred_element_type=jnp.float32) + b0_ref[...]

    # Hidden blocks.  BatchNorm1d(eval) already folded into w_ref/b_ref in the
    # wrapper; Dropout(eval) is the identity.  Fully unrolled: static indices,
    # cross-layer scheduling visibility for the LLO scheduler.
    for i in range(NL):
        hl = jnp.dot(h.astype(MATMUL_DTYPE), w_ref[i],
                     preferred_element_type=jnp.float32) + b_ref[i]
        h = jnp.maximum(hl, 0.0)

    # Last Linear: (BM, NW_PAD) @ (NW_PAD, NBANDS_PAD).  Lane-dense output.
    out_ref[...] = jnp.dot(h.astype(MATMUL_DTYPE), wl_ref[...],
                           preferred_element_type=jnp.float32) + bl_ref[...]


@jax.jit
def decoder_forward(x, kparams):
    """x: [B, NFEAT] float32 -> [B, NBANDS] float32."""
    w0, b0, w, b, wl, bl = kparams
    B = x.shape[0]

    # Batch tile: one tile (rounded up to 8 rows) for small batches, 256-row
    # tiles for large batches (fills the 256-wide MXU on v6e/v7x; >=2 grid
    # steps then shard across TensorCores via "parallel").
    if B <= 256:
        bm = max(_round_up(B, 8), 8)
    else:
        bm = 256
    bp = _round_up(B, bm)

    # Zero-pad batch rows to the tile and features to a full 128-lane width
    # (unmasked vld on the x tile; padded columns multiply zero weight rows).
    x = jnp.pad(x, ((0, bp - B), (0, NFEAT_PAD - NFEAT)))

    def full_spec(shape):
        # Whole-array block, same block index for every grid step (weights stay
        # resident in VMEM; Pallas skips re-DMA for unchanged block indices).
        return pl.BlockSpec(shape, lambda i, _n=len(shape): (0,) * _n)

    out = pl.pallas_call(
        decoder_kernel,
        out_shape=jax.ShapeDtypeStruct((bp, NBANDS_PAD), jnp.float32),
        grid=(bp // bm,),
        in_specs=[
            pl.BlockSpec((bm, NFEAT_PAD), lambda i: (i, 0)),  # x tile (f32)
            full_spec(w0.shape),   # (NFEAT_PAD, NW_PAD)      bf16
            full_spec(b0.shape),   # (1, NW_PAD)              f32
            full_spec(w.shape),    # (NL, NW_PAD, NW_PAD)     bf16 (BN folded)
            full_spec(b.shape),    # (NL, 1, NW_PAD)          f32  (BN folded)
            full_spec(wl.shape),   # (NW_PAD, NBANDS_PAD)     bf16
            full_spec(bl.shape),   # (1, NBANDS_PAD)          f32
        ],
        out_specs=pl.BlockSpec((bm, NBANDS_PAD), lambda i: (i, 0)),
        compiler_params=pltpu.CompilerParams(
            dimension_semantics=("parallel",)),
    )(x, w0, b0, w, b, wl, bl)

    return out[:B, :NBANDS]


def init_params(key):
    """Deterministic synthetic parameters (shapes match the PyTorch module,
    Linear weights stored pre-transposed as [in, out])."""
    ks = jax.random.split(key, 10)
    s0 = 1.0 / jnp.sqrt(NFEAT)
    sh = 1.0 / jnp.sqrt(NW)

    w0 = jax.random.uniform(ks[0], (NFEAT, NW), jnp.float32, -s0, s0)
    b0 = jax.random.uniform(ks[1], (NW,), jnp.float32, -s0, s0)

    gamma = 1.0 + 0.1 * jax.random.normal(ks[2], (NL, NW), jnp.float32)
    beta = 0.1 * jax.random.normal(ks[3], (NL, NW), jnp.float32)
    run_mean = 0.1 * jax.random.normal(ks[4], (NL, NW), jnp.float32)
    run_var = jnp.abs(1.0 + 0.1 * jax.random.normal(ks[5], (NL, NW), jnp.float32))

    w = jax.random.uniform(ks[6], (NL, NW, NW), jnp.float32, -sh, sh)
    b = jax.random.uniform(ks[7], (NL, NW), jnp.float32, -sh, sh)

    wl = jax.random.uniform(ks[8], (NW, NBANDS), jnp.float32, -sh, sh)
    bl = jax.random.uniform(ks[9], (NBANDS,), jnp.float32, -sh, sh)

    return (w0, b0, gamma, beta, run_mean, run_var, w, b, wl, bl)


def fold_and_pad_params(raw, matmul_dtype=MATMUL_DTYPE):
    """Fold BatchNorm(eval) into the following Linear, zero-pad to lane-dense
    shapes, and cast weights to the MXU dtype (biases stay f32)."""
    w0, b0, gamma, beta, run_mean, run_var, w, b, wl, bl = raw

    inv_std = 1.0 / jnp.sqrt(run_var + BN_EPS)        # (NL, NW)
    bn_scale = gamma * inv_std                        # (NL, NW)
    bn_shift = beta - run_mean * gamma * inv_std      # (NL, NW)

    # hb = h*scale + shift ;  hb @ W + b  ==  h @ (scale[:,None]*W) + (shift @ W + b)
    w_f = bn_scale[:, :, None] * w                    # (NL, NW, NW)
    b_f = jnp.einsum('ln,lnm->lm', bn_shift, w) + b   # (NL, NW)

    df = NFEAT_PAD - NFEAT
    dn = NW_PAD - NW
    db = NBANDS_PAD - NBANDS
    w0p = jnp.pad(w0, ((0, df), (0, dn)))
    b0p = jnp.pad(b0, (0, dn)).reshape(1, NW_PAD)
    wp = jnp.pad(w_f, ((0, 0), (0, dn), (0, dn)))
    bfp = jnp.pad(b_f, ((0, 0), (0, dn))).reshape(NL, 1, NW_PAD)
    wlp = jnp.pad(wl, ((0, dn), (0, db)))
    blp = jnp.pad(bl, (0, db)).reshape(1, NBANDS_PAD)

    return (w0p.astype(matmul_dtype), b0p,
            wp.astype(matmul_dtype), bfp,
            wlp.astype(matmul_dtype), blp)


def reference_forward(x, raw):
    """Pure-JAX f32 reference mirroring the PyTorch eval-mode forward."""
    w0, b0, gamma, beta, run_mean, run_var, w, b, wl, bl = raw
    inv_std = 1.0 / jnp.sqrt(run_var + BN_EPS)
    h = x @ w0 + b0
    for i in range(NL):
        hb = (h - run_mean[i]) * inv_std[i] * gamma[i] + beta[i]
        h = jnp.maximum(hb @ w[i] + b[i], 0.0)       # Dropout(eval) = identity
    return h @ wl + bl


if __name__ == "__main__":
    key = jax.random.PRNGKey(0)
    kx, kp = jax.random.split(key)

    B = 16
    x = jax.random.normal(kx, (B, NFEAT), jnp.float32)
    raw = init_params(kp)
    kparams = fold_and_pad_params(raw)

    out = jax.block_until_ready(decoder_forward(x, kparams))
    ref = reference_forward(x, raw)

    assert out.shape == (B, NBANDS)
    # bf16 matmuls with f32 accumulation: a few 1e-3 absolute error at these scales.
    assert jnp.allclose(out, ref, atol=2e-2, rtol=2e-2)

    print("KERNEL_OK")
</pallas_src>

<mosaic_0001>
module attributes {stable_mosaic.version = 11 : i64} {
  func.func @decoder_kernel(%arg0: i32, %arg1: memref<16x128xf32, #tpu.memory_space<vmem>>, %arg2: memref<128x256xbf16, #tpu.memory_space<vmem>>, %arg3: memref<1x256xf32, #tpu.memory_space<vmem>>, %arg4: memref<4x256x256xbf16, #tpu.memory_space<vmem>>, %arg5: memref<4x1x256xf32, #tpu.memory_space<vmem>>, %arg6: memref<256x128xbf16, #tpu.memory_space<vmem>>, %arg7: memref<1x128xf32, #tpu.memory_space<vmem>>, %arg8: memref<16x128xf32, #tpu.memory_space<vmem>>) attributes {dimension_semantics = [#tpu.dimension_semantics<parallel>], iteration_bounds = array<i64: 1>, scalar_prefetch = 0 : i64, scratch_operands = 0 : i64, tpu.core_type = #tpu.core_type<tc>, window_params = [{transform_indices = @transform_0, window_bounds = array<i64: 16, 128>}, {pipeline_mode = #tpu.pipeline_mode<synchronous>, transform_indices = @transform_1, window_bounds = array<i64: 128, 256>}, {pipeline_mode = #tpu.pipeline_mode<synchronous>, transform_indices = @transform_2, window_bounds = array<i64: 1, 256>}, {pipeline_mode = #tpu.pipeline_mode<synchronous>, transform_indices = @transform_3, window_bounds = array<i64: 4, 256, 256>}, {pipeline_mode = #tpu.pipeline_mode<synchronous>, transform_indices = @transform_4, window_bounds = array<i64: 4, 1, 256>}, {pipeline_mode = #tpu.pipeline_mode<synchronous>, transform_indices = @transform_5, window_bounds = array<i64: 256, 128>}, {pipeline_mode = #tpu.pipeline_mode<synchronous>, transform_indices = @transform_6, window_bounds = array<i64: 1, 128>}, {transform_indices = @transform_7, window_bounds = array<i64: 16, 128>}]} {
    %c0 = arith.constant 0 : index
    %c0_0 = arith.constant 0 : index
    %0 = vector.load %arg1[%c0, %c0_0] : memref<16x128xf32, #tpu.memory_space<vmem>>, vector<16x128xf32>
    %1 = arith.truncf %0 : vector<16x128xf32> to vector<16x128xbf16>
    %c0_1 = arith.constant 0 : index
    %c0_2 = arith.constant 0 : index
    %2 = vector.load %arg2[%c0_1, %c0_2] : memref<128x256xbf16, #tpu.memory_space<vmem>>, vector<128x256xbf16>
    %cst = arith.constant dense<0.000000e+00> : vector<16x256xf32>
    %3 = tpu.matmul %1, %2, %cst {dimension_numbers = #tpu.dot_dimension_numbers<[1], [0], [0], [1], [0, 0, 1, 1], [], []>} : vector<16x128xbf16>, vector<128x256xbf16>, vector<16x256xf32> -> vector<16x256xf32>
    %c0_3 = arith.constant 0 : index
    %c0_4 = arith.constant 0 : index
    %4 = vector.load %arg3[%c0_3, %c0_4] : memref<1x256xf32, #tpu.memory_space<vmem>>, vector<1x256xf32>
    %5 = vector.broadcast %4 : vector<1x256xf32> to vector<16x256xf32>
    %6 = arith.addf %3, %5 : vector<16x256xf32>
    %7 = arith.truncf %6 : vector<16x256xf32> to vector<16x256xbf16>
    %c0_5 = arith.constant 0 : index
    %c0_6 = arith.constant 0 : index
    %c0_7 = arith.constant 0 : index
    %8 = vector.load %arg4[%c0_5, %c0_6, %c0_7] : memref<4x256x256xbf16, #tpu.memory_space<vmem>>, vector<1x256x256xbf16>
    %9 = vector.shape_cast %8 : vector<1x256x256xbf16> to vector<256x256xbf16>
    %cst_8 = arith.constant dense<0.000000e+00> : vector<16x256xf32>
    %10 = tpu.matmul %7, %9, %cst_8 {dimension_numbers = #tpu.dot_dimension_numbers<[1], [0], [0], [1], [0, 0, 1, 1], [], []>} : vector<16x256xbf16>, vector<256x256xbf16>, vector<16x256xf32> -> vector<16x256xf32>
    %c0_9 = arith.constant 0 : index
    %c0_10 = arith.constant 0 : index
    %c0_11 = arith.constant 0 : index
    %11 = vector.load %arg5[%c0_9, %c0_10, %c0_11] : memref<4x1x256xf32, #tpu.memory_space<vmem>>, vector<1x1x256xf32>
    %12 = vector.shape_cast %11 : vector<1x1x256xf32> to vector<1x256xf32>
    %13 = vector.broadcast %12 : vector<1x256xf32> to vector<16x256xf32>
    %14 = arith.addf %10, %13 : vector<16x256xf32>
    %cst_12 = arith.constant 0.000000e+00 : f32
    %15 = vector.broadcast %cst_12 : f32 to vector<16x256xf32>
    %16 = arith.maximumf %14, %15 : vector<16x256xf32>
    %17 = arith.truncf %16 : vector<16x256xf32> to vector<16x256xbf16>
    %c1 = arith.constant 1 : index
    %c0_13 = arith.constant 0 : index
    %c0_14 = arith.constant 0 : index
    %18 = vector.load %arg4[%c1, %c0_13, %c0_14] : memref<4x256x256xbf16, #tpu.memory_space<vmem>>, vector<1x256x256xbf16>
    %19 = vector.shape_cast %18 : vector<1x256x256xbf16> to vector<256x256xbf16>
    %cst_15 = arith.constant dense<0.000000e+00> : vector<16x256xf32>
    %20 = tpu.matmul %17, %19, %cst_15 {dimension_numbers = #tpu.dot_dimension_numbers<[1], [0], [0], [1], [0, 0, 1, 1], [], []>} : vector<16x256xbf16>, vector<256x256xbf16>, vector<16x256xf32> -> vector<16x256xf32>
    %c1_16 = arith.constant 1 : index
    %c0_17 = arith.constant 0 : index
    %c0_18 = arith.constant 0 : index
    %21 = vector.load %arg5[%c1_16, %c0_17, %c0_18] : memref<4x1x256xf32, #tpu.memory_space<vmem>>, vector<1x1x256xf32>
    %22 = vector.shape_cast %21 : vector<1x1x256xf32> to vector<1x256xf32>
    %23 = vector.broadcast %22 : vector<1x256xf32> to vector<16x256xf32>
    %24 = arith.addf %20, %23 : vector<16x256xf32>
    %cst_19 = arith.constant 0.000000e+00 : f32
    %25 = vector.broadcast %cst_19 : f32 to vector<16x256xf32>
    %26 = arith.maximumf %24, %25 : vector<16x256xf32>
    %27 = arith.truncf %26 : vector<16x256xf32> to vector<16x256xbf16>
    %c2 = arith.constant 2 : index
    %c0_20 = arith.constant 0 : index
    %c0_21 = arith.constant 0 : index
    %28 = vector.load %arg4[%c2, %c0_20, %c0_21] : memref<4x256x256xbf16, #tpu.memory_space<vmem>>, vector<1x256x256xbf16>
    %29 = vector.shape_cast %28 : vector<1x256x256xbf16> to vector<256x256xbf16>
    %cst_22 = arith.constant dense<0.000000e+00> : vector<16x256xf32>
    %30 = tpu.matmul %27, %29, %cst_22 {dimension_numbers = #tpu.dot_dimension_numbers<[1], [0], [0], [1], [0, 0, 1, 1], [], []>} : vector<16x256xbf16>, vector<256x256xbf16>, vector<16x256xf32> -> vector<16x256xf32>
    %c2_23 = arith.constant 2 : index
    %c0_24 = arith.constant 0 : index
    %c0_25 = arith.constant 0 : index
    %31 = vector.load %arg5[%c2_23, %c0_24, %c0_25] : memref<4x1x256xf32, #tpu.memory_space<vmem>>, vector<1x1x256xf32>
    %32 = vector.shape_cast %31 : vector<1x1x256xf32> to vector<1x256xf32>
    %33 = vector.broadcast %32 : vector<1x256xf32> to vector<16x256xf32>
    %34 = arith.addf %30, %33 : vector<16x256xf32>
    %cst_26 = arith.constant 0.000000e+00 : f32
    %35 = vector.broadcast %cst_26 : f32 to vector<16x256xf32>
    %36 = arith.maximumf %34, %35 : vector<16x256xf32>
    %37 = arith.truncf %36 : vector<16x256xf32> to vector<16x256xbf16>
    %c3 = arith.constant 3 : index
    %c0_27 = arith.constant 0 : index
    %c0_28 = arith.constant 0 : index
    %38 = vector.load %arg4[%c3, %c0_27, %c0_28] : memref<4x256x256xbf16, #tpu.memory_space<vmem>>, vector<1x256x256xbf16>
    %39 = vector.shape_cast %38 : vector<1x256x256xbf16> to vector<256x256xbf16>
    %cst_29 = arith.constant dense<0.000000e+00> : vector<16x256xf32>
    %40 = tpu.matmul %37, %39, %cst_29 {dimension_numbers = #tpu.dot_dimension_numbers<[1], [0], [0], [1], [0, 0, 1, 1], [], []>} : vector<16x256xbf16>, vector<256x256xbf16>, vector<16x256xf32> -> vector<16x256xf32>
    %c3_30 = arith.constant 3 : index
    %c0_31 = arith.constant 0 : index
    %c0_32 = arith.constant 0 : index
    %41 = vector.load %arg5[%c3_30, %c0_31, %c0_32] : memref<4x1x256xf32, #tpu.memory_space<vmem>>, vector<1x1x256xf32>
    %42 = vector.shape_cast %41 : vector<1x1x256xf32> to vector<1x256xf32>
    %43 = vector.broadcast %42 : vector<1x256xf32> to vector<16x256xf32>
    %44 = arith.addf %40, %43 : vector<16x256xf32>
    %cst_33 = arith.constant 0.000000e+00 : f32
    %45 = vector.broadcast %cst_33 : f32 to vector<16x256xf32>
    %46 = arith.maximumf %44, %45 : vector<16x256xf32>
    %47 = arith.truncf %46 : vector<16x256xf32> to vector<16x256xbf16>
    %c0_34 = arith.constant 0 : index
    %c0_35 = arith.constant 0 : index
    %48 = vector.load %arg6[%c0_34, %c0_35] : memref<256x128xbf16, #tpu.memory_space<vmem>>, vector<256x128xbf16>
    %cst_36 = arith.constant dense<0.000000e+00> : vector<16x128xf32>
    %49 = tpu.matmul %47, %48, %cst_36 {dimension_numbers = #tpu.dot_dimension_numbers<[1], [0], [0], [1], [0, 0, 1, 1], [], []>} : vector<16x256xbf16>, vector<256x128xbf16>, vector<16x128xf32> -> vector<16x128xf32>
    %c0_37 = arith.constant 0 : index
    %c0_38 = arith.constant 0 : index
    %50 = vector.load %arg7[%c0_37, %c0_38] : memref<1x128xf32, #tpu.memory_space<vmem>>, vector<1x128xf32>
    %51 = vector.broadcast %50 : vector<1x128xf32> to vector<16x128xf32>
    %52 = arith.addf %49, %51 : vector<16x128xf32>
    %c0_39 = arith.constant 0 : index
    %c0_40 = arith.constant 0 : index
    %53 = vector.load %arg8[%c0_39, %c0_40] : memref<16x128xf32, #tpu.memory_space<vmem>>, vector<16x128xf32>
    tpu.vector_store %arg8[%c0_39, %c0_40], %52 {strides = array<i32>} : memref<16x128xf32, #tpu.memory_space<vmem>>, vector<16x128xf32>,
    return
  }
  func.func @transform_0(%arg0: i32) -> (i32, i32) {
    %c0_i32 = arith.constant 0 : i32
    %c0_i32_0 = arith.constant 0 : i32
    return %arg0, %c0_i32 : i32, i32
  }
  func.func @transform_1(%arg0: i32) -> (i32, i32) {
    %c0_i32 = arith.constant 0 : i32
    %c0_i32_0 = arith.constant 0 : i32
    %c0_i32_1 = arith.constant 0 : i32
    return %c0_i32, %c0_i32_0 : i32, i32
  }
  func.func @transform_2(%arg0: i32) -> (i32, i32) {
    %c0_i32 = arith.constant 0 : i32
    %c0_i32_0 = arith.constant 0 : i32
    %c0_i32_1 = arith.constant 0 : i32
    return %c0_i32, %c0_i32_0 : i32, i32
  }
  func.func @transform_3(%arg0: i32) -> (i32, i32, i32) {
    %c0_i32 = arith.constant 0 : i32
    %c0_i32_0 = arith.constant 0 : i32
    %c0_i32_1 = arith.constant 0 : i32
    %c0_i32_2 = arith.constant 0 : i32
    return %c0_i32, %c0_i32_0, %c0_i32_1 : i32, i32, i32
  }
  func.func @transform_4(%arg0: i32) -> (i32, i32, i32) {
    %c0_i32 = arith.constant 0 : i32
    %c0_i32_0 = arith.constant 0 : i32
    %c0_i32_1 = arith.constant 0 : i32
    %c0_i32_2 = arith.constant 0 : i32
    return %c0_i32, %c0_i32_0, %c0_i32_1 : i32, i32, i32
  }
  func.func @transform_5(%arg0: i32) -> (i32, i32) {
    %c0_i32 = arith.constant 0 : i32
    %c0_i32_0 = arith.constant 0 : i32
    %c0_i32_1 = arith.constant 0 : i32
    return %c0_i32, %c0_i32_0 : i32, i32
  }
  func.func @transform_6(%arg0: i32) -> (i32, i32) {
    %c0_i32 = arith.constant 0 : i32
    %c0_i32_0 = arith.constant 0 : i32
    %c0_i32_1 = arith.constant 0 : i32
    return %c0_i32, %c0_i32_0 : i32, i32
  }
  func.func @transform_7(%arg0: i32) -> (i32, i32) {
    %c0_i32 = arith.constant 0 : i32
    %c0_i32_0 = arith.constant 0 : i32
    return %arg0, %c0_i32 : i32, i32
  }
}

</mosaic_0001>

<bundles_post_ra>
// kernel: decoder_forward.1
= control target key start
LH: loop header
LB: loop body
LE: loop exit
PB: predicated region body
PF: predicated region fallthrough
CT: control target
= control target key end

     0   :  { %12 = vsyncpa [#allocation3], 0  ;;  %s2060_s0 = inlined_call_operand.vmem [shape: f32[16,128], index: 0, kind: input, shape index: {}]   ;;  %s2061_s1 = inlined_call_operand.hbm [shape: bf16[128,256], index: 1, kind: input, shape index: {}]   ;;  %s2062_s2 = inlined_call_operand.vmem [shape: f32[1,256], index: 2, kind: input, shape index: {}]   ;;  %s2063_s3 = inlined_call_operand.hbm [shape: bf16[4,256,256], index: 3, kind: input, shape index: {}]   ;;  %s2064_s4 = inlined_call_operand.vmem [shape: f32[4,1,256], index: 4, kind: input, shape index: {}]   ;;  %s2065_s5 = inlined_call_operand.hbm [shape: bf16[256,128], index: 5, kind: input, shape index: {}]   ;;  %s2066_s6 = inlined_call_operand.vmem [shape: f32[1,128], index: 6, kind: input, shape index: {}]   ;;  %s2067_s7 = inlined_call_operand.hbm [shape: f32[16,128], index: 7, kind: output, shape index: {}]  }
   0x1   :  { %13 = vsyncpa [#allocation6], 0 }
   0x2   :  { %14 = vsyncpa [#allocation4], 0  ;;  %s1952_s24 = smov [#allocation5]   ;;  %s1953_s26 = smov [#allocation2]  }
   0x3   :  { %s36_s25 = sshll.u32 %s1952_s24, 4  ;;  %s22_s27 = sshll.u32 %s1953_s26, 4  ;;  %s37_s25 = int_to_ptr.vmem [resolvable:$true] %s36_s25  ;;  %s23_s27 = int_to_ptr.vmem [resolvable:$true] %s22_s27 }
   0x4   :  { %s1874_s28 = scalar_lea.vmem %s37_s25, 16384  ;;  %p1879_p1 = scmp.lt.s32.totalorder %s37_s25, %s37_s25 }
   0x5   :  { %p1875_p0 = scmp.ne.s32.totalorder %s37_s25, %s1874_s28  ;;  %p1880_p2 = scmp.lt.s32.totalorder %s1874_s28, %s1874_s28 }
   0x7   :  { %p1881_p3 = por %p1880_p2, %p1879_p1 }
   0x9   :  { %p1882_p4 = pnand %p1881_p3, %p1875_p0 }
   0xb   :  { %1885 = shalt.err (!%p1882_p4)
}
   0xc   :  { %s1954_s29 = smov 128   ;;  %s1955_s30 = smov 8  }
   0xd   :  { %42 = dma.hbm_to_vmem [thread:$0]  %s2063_s3, 16384, %s37_s25, [#allocation6], %s1954_s29, %s1954_s29, %s1955_s30  }
   0xe   :  { %s1894_s10 = scalar_lea.vmem %s23_s27, 2048  ;;  %p1899_p6 = scmp.lt.s32.totalorder %s23_s27, %s23_s27 }
   0xf   :  { %p1895_p5 = scmp.ne.s32.totalorder %s23_s27, %s1894_s10  ;;  %p1900_p7 = scmp.lt.s32.totalorder %s1894_s10, %s1894_s10 }
  0x11   :  { %p1901_p8 = por %p1900_p7, %p1899_p6 }
  0x13   :  { %p1902_p9 = pnand %p1901_p8, %p1895_p5 }
  0x15   :  { %1905 = shalt.err (!%p1902_p9)
}
  0x16   :  { %28 = dma.hbm_to_vmem [thread:$0]  %s2061_s1, 2048, %s23_s27, [#allocation3], %s1954_s29, %s1954_s29, %s1955_s30  }
  0x17   :  { %s1956_s13 = smov [#allocation7]  }
  0x18   :  { %s50_s14 = sshll.u32 %s1956_s13, 4  ;;  %s51_s14 = int_to_ptr.vmem [resolvable:$true] %s50_s14 }
  0x19   :  { %s1914_s15 = scalar_lea.vmem %s51_s14, 2048  ;;  %p1919_p11 = scmp.lt.s32.totalorder %s51_s14, %s51_s14 }
  0x1a   :  { %p1915_p10 = scmp.ne.s32.totalorder %s51_s14, %s1914_s15  ;;  %p1920_p12 = scmp.lt.s32.totalorder %s1914_s15, %s1914_s15 }
  0x1c   :  { %p1921_p13 = por %p1920_p12, %p1919_p11 }
  0x1e   :  { %p1922_p0 = pnand %p1921_p13, %p1915_p10 }
  0x20   :  { %1925 = shalt.err (!%p1922_p0)
}
  0x21   :  { %s1957_s3 = smov 64   ;;  %s1958_s16 = smov 4  }
  0x22   :  { %56 = dma.hbm_to_vmem [thread:$0]  %s2065_s5, 2048, %s51_s14, [#allocation6], %s1957_s3, %s1957_s3, %s1958_s16  }
  0x23   :  { %1946 = dma.done.wait [#allocation3], 2048  }
  0x24   :  { %1947 = vsyncadd [#allocation3], 4294965248 }
  0x25   :  { %1948 = dma.done.wait [#allocation6], 18432  }
  0x26   :  { %1949 = vsyncadd [#allocation6], 4294948864  ;;  %v1959_v0 = vmov 0   ;;  %v1634_v1 = vld [vmem:[#allocation2 + $0x74] ss:$8 sps:$4 sm:$0xff]   ;;  %v69_v26 = vld [vmem:[%s2060_s0] sm:$0xff] }
  0x27   :  { %212 = vmatprep.mubr.bf16.mxu0 %v1959_v0  ;;  %v1636_v2 = vld [vmem:[#allocation2 + $0x70] ss:$8 sps:$4 sm:$0xff]   ;;  %180 = vmatprep.subr.bf16.mxu0 %v1634_v1  ;;  %v1637_v3 = vld [vmem:[#allocation2 + $0x64] ss:$8 sps:$4 sm:$0xff]   ;;  %v1639_v4 = vld [vmem:[#allocation2 + $0x60] ss:$8 sps:$4 sm:$0xff]  }
  0x28   :  { %181 = vmatpush1.bf16.msra.mxu0 %v1636_v2  ;;  %v1640_v5 = vld [vmem:[#allocation2 + $0x54] ss:$8 sps:$4 sm:$0xff]   ;;  %v1642_v6 = vld [vmem:[#allocation2 + $0x50] ss:$8 sps:$4 sm:$0xff]   ;;  %v1643_v7 = vld [vmem:[#allocation2 + $0x44] ss:$8 sps:$4 sm:$0xff]  }
  0x29   :  { %182 = vmatprep.subr.bf16.mxu0 %v1637_v3  ;;  %v1645_v8 = vld [vmem:[#allocation2 + $0x40] ss:$8 sps:$4 sm:$0xff]   ;;  %v1646_v9 = vld [vmem:[#allocation2 + $0x34] ss:$8 sps:$4 sm:$0xff]   ;;  %v1660_v11 = vld [vmem:[#allocation5 + $0x70] ss:$8 sps:$4 sm:$0xff]  }
  0x2a   :  { %v1658_v10 = vld [vmem:[#allocation5 + $0x74] ss:$8 sps:$4 sm:$0xff]   ;;  %v1661_v12 = vld [vmem:[#allocation5 + $0x64] ss:$8 sps:$4 sm:$0xff]   ;;  %v1648_v13 = vld [vmem:[#allocation2 + $0x30] ss:$8 sps:$4 sm:$0xff]  }
  0x2b   :  { %429 = vmatprep.subr.bf16.mxu1 %v1658_v10  ;;  %v1663_v14 = vld [vmem:[#allocation5 + $0x60] ss:$8 sps:$4 sm:$0xff]   ;;  %v1649_v15 = vld [vmem:[#allocation2 + $0x24] ss:$8 sps:$4 sm:$0xff]   ;;  %v1664_v16 = vld [vmem:[#allocation5 + $0x54] ss:$8 sps:$4 sm:$0xff]  }
  0x2c   :  { %183 = vmatpush1.bf16.msra.mxu0 %v1639_v4  ;;  %430 = vmatpush1.bf16.msra.mxu1 %v1660_v11  ;;  %v1651_v17 = vld [vmem:[#allocation2 + $0x20] ss:$8 sps:$4 sm:$0xff]   ;;  %v1666_v18 = vld [vmem:[#allocation5 + $0x50] ss:$8 sps:$4 sm:$0xff]   ;;  %v1652_v19 = vld [vmem:[#allocation2 + $0x14] ss:$8 sps:$4 sm:$0xff]  }
  0x2d   :  { %184 = vmatprep.subr.bf16.mxu0 %v1640_v5  ;;  %431 = vmatprep.subr.bf16.mxu1 %v1661_v12  ;;  %v1667_v20 = vld [vmem:[#allocation5 + $0x44] ss:$8 sps:$4 sm:$0xff]   ;;  %v1654_v21 = vld [vmem:[#allocation2 + $0x10] ss:$8 sps:$4 sm:$0xff]   ;;  %v1669_v22 = vld [vmem:[#allocation5 + $0x40] ss:$8 sps:$4 sm:$0xff]  }
  0x2e   :  { %v1655_v23 = vld [vmem:[#allocation2 + $0x4] ss:$8 sps:$4 sm:$0xff]   ;;  %v1670_v24 = vld [vmem:[#allocation5 + $0x34] ss:$8 sps:$4 sm:$0xff]   ;;  %v1657_v25 = vld [vmem:[#allocation2] ss:$8 sps:$4 sm:$0xff]  }
  0x2f   :  { %v70_v27 = vld [vmem:[%s2060_s0 + $0x8] sm:$0xff]  ;;  %v1672_v28 = vld [vmem:[#allocation5 + $0x30] ss:$8 sps:$4 sm:$0xff]   ;;  %v1676_v32 = vld [vmem:[#allocation5 + $0x14] ss:$8 sps:$4 sm:$0xff]   ;;  %s1960_s9 = smov [#allocation8]  }
  0x30   :  { %185 = vmatpush1.bf16.msra.mxu0 %v1642_v6  ;;  %432 = vmatpush1.bf16.msra.mxu1 %v1663_v14  ;;  %v1673_v29 = vld [vmem:[#allocation5 + $0x24] ss:$8 sps:$4 sm:$0xff]   ;;  %v1675_v30 = vld [vmem:[#allocation5 + $0x20] ss:$8 sps:$4 sm:$0xff]   ;;  %v71_v31 = vpack.c.bf16 %v70_v27, %v69_v26  ;;  %v1678_v33 = vld [vmem:[#allocation5 + $0x10] ss:$8 sps:$4 sm:$0xff]   ;;  %v90_v14 = vlaneseq }
  0x31   :  { %186 = vmatprep.subr.bf16.mxu0 %v1643_v7  ;;  %433 = vmatprep.subr.bf16.mxu1 %v1664_v16  ;;  %v1679_v34 = vld [vmem:[#allocation5 + $0x4] ss:$8 sps:$4 sm:$0xff]   ;;  %v1681_v35 = vld [vmem:[#allocation5] ss:$8 sps:$4 sm:$0xff]   ;;  %v1682_v36 = vld [vmem:[#allocation5 + $0xf4] ss:$8 sps:$4 sm:$0xff]  }
  0x32   :  { %v1684_v37 = vld [vmem:[#allocation5 + $0xf0] ss:$8 sps:$4 sm:$0xff]   ;;  %v1685_v38 = vld [vmem:[#allocation5 + $0xe4] ss:$8 sps:$4 sm:$0xff]   ;;  %v1687_v39 = vld [vmem:[#allocation5 + $0xe0] ss:$8 sps:$4 sm:$0xff]  }
  0x33   :  { %v1688_v40 = vld [vmem:[#allocation5 + $0xd4] ss:$8 sps:$4 sm:$0xff]   ;;  %v1690_v41 = vld [vmem:[#allocation5 + $0xd0] ss:$8 sps:$4 sm:$0xff]   ;;  %v1691_v42 = vld [vmem:[#allocation5 + $0xc4] ss:$8 sps:$4 sm:$0xff]  }
  0x34   :  { %187 = vmatpush1.bf16.msra.mxu0 %v1645_v8  ;;  %434 = vmatpush1.bf16.msra.mxu1 %v1666_v18  ;;  %v1693_v43 = vld [vmem:[#allocation5 + $0xc0] ss:$8 sps:$4 sm:$0xff]   ;;  %v1694_v44 = vld [vmem:[#allocation5 + $0xb4] ss:$8 sps:$4 sm:$0xff]   ;;  %v1696_v45 = vld [vmem:[#allocation5 + $0xb0] ss:$8 sps:$4 sm:$0xff]  }
  0x35   :  { %188 = vmatprep.subr.bf16.mxu0 %v1646_v9  ;;  %435 = vmatprep.subr.bf16.mxu1 %v1667_v20  ;;  %v1697_v46 = vld [vmem:[#allocation5 + $0xa4] ss:$8 sps:$4 sm:$0xff]   ;;  %v1699_v47 = vld [vmem:[#allocation5 + $0xa0] ss:$8 sps:$4 sm:$0xff]   ;;  %v1700_v48 = vld [vmem:[#allocation5 + $0x94] ss:$8 sps:$4 sm:$0xff]  }
  0x36   :  { %v1702_v49 = vld [vmem:[#allocation5 + $0x90] ss:$8 sps:$4 sm:$0xff]   ;;  %v1703_v50 = vld [vmem:[#allocation5 + $0x84] ss:$8 sps:$4 sm:$0xff]   ;;  %v1705_v51 = vld [vmem:[#allocation5 + $0x80] ss:$8 sps:$4 sm:$0xff]  }
  0x37   :  { %v1706_v52 = vld [vmem:[#allocation5 + $0x170] ss:$8 sps:$4 sm:$0xff]   ;;  %v1708_v53 = vld [vmem:[#allocation5 + $0x174] ss:$8 sps:$4 sm:$0xff]   ;;  %v1711_v54 = vld [vmem:[#allocation5 + $0x164] ss:$8 sps:$4 sm:$0xff]  }
  0x38   :  { %189 = vmatpush1.bf16.msra.mxu0 %v1648_v13  ;;  %436 = vmatpush1.bf16.msra.mxu1 %v1669_v22  ;;  %v1709_v55 = vld [vmem:[#allocation5 + $0x160] ss:$8 sps:$4 sm:$0xff]   ;;  %v1714_v56 = vld [vmem:[#allocation5 + $0x154] ss:$8 sps:$4 sm:$0xff]   ;;  %v1712_v57 = vld [vmem:[#allocation5 + $0x150] ss:$8 sps:$4 sm:$0xff]  }
  0x39   :  { %190 = vmatprep.subr.bf16.mxu0 %v1649_v15  ;;  %437 = vmatprep.subr.bf16.mxu1 %v1670_v24  ;;  %v1717_v58 = vld [vmem:[#allocation5 + $0x144] ss:$8 sps:$4 sm:$0xff]   ;;  %v1715_v59 = vld [vmem:[#allocation5 + $0x140] ss:$8 sps:$4 sm:$0xff]   ;;  %v1720_v60 = vld [vmem:[#allocation5 + $0x134] ss:$8 sps:$4 sm:$0xff]  }
  0x3a   :  { %v1718_v61 = vld [vmem:[#allocation5 + $0x130] ss:$8 sps:$4 sm:$0xff]   ;;  %v1723_v62 = vld [vmem:[#allocation5 + $0x124] ss:$8 sps:$4 sm:$0xff]   ;;  %v1721_v63 = vld [vmem:[#allocation5 + $0x120] ss:$8 sps:$4 sm:$0xff]  }
  0x3b   :  { %v1726_v0 = vld [vmem:[#allocation5 + $0x114] ss:$8 sps:$4 sm:$0xff]   ;;  %v1724_v1 = vld [vmem:[#allocation5 + $0x110] ss:$8 sps:$4 sm:$0xff]   ;;  %v1729_v2 = vld [vmem:[#allocation5 + $0x104] ss:$8 sps:$4 sm:$0xff]  }
  0x3c   :  { %191 = vmatpush1.bf16.msra.mxu0 %v1651_v17  ;;  %438 = vmatpush1.bf16.msra.mxu1 %v1672_v28  ;;  %v1727_v3 = vld [vmem:[#allocation5 + $0x100] ss:$8 sps:$4 sm:$0xff]   ;;  %v1732_v4 = vld [vmem:[#allocation5 + $0x1f4] ss:$8 sps:$4 sm:$0xff]   ;;  %v1730_v5 = vld [vmem:[#allocation5 + $0x1f0] ss:$8 sps:$4 sm:$0xff]  }
  0x3d   :  { %192 = vmatprep.subr.bf16.mxu0 %v1652_v19  ;;  %439 = vmatprep.subr.bf16.mxu1 %v1673_v29  ;;  %v1735_v6 = vld [vmem:[#allocation5 + $0x1e4] ss:$8 sps:$4 sm:$0xff]   ;;  %v1733_v7 = vld [vmem:[#allocation5 + $0x1e0] ss:$8 sps:$4 sm:$0xff]   ;;  %v1738_v8 = vld [vmem:[#allocation5 + $0x1d4] ss:$8 sps:$4 sm:$0xff]  }
  0x3e   :  { %v1736_v9 = vld [vmem:[#allocation5 + $0x1d0] ss:$8 sps:$4 sm:$0xff]   ;;  %v1741_v10 = vld [vmem:[#allocation5 + $0x1c4] ss:$8 sps:$4 sm:$0xff]   ;;  %v1739_v11 = vld [vmem:[#allocation5 + $0x1c0] ss:$8 sps:$4 sm:$0xff]  }
  0x3f   :  { %v1744_v12 = vld [vmem:[#allocation5 + $0x1b4] ss:$8 sps:$4 sm:$0xff]   ;;  %v1742_v13 = vld [vmem:[#allocation5 + $0x1b0] ss:$8 sps:$4 sm:$0xff]   ;;  %v91_v15 = vshrl.u32 %v90_v14, 7  ;;  %s1426_s10 = sshll.u32 %s1960_s9, 4  ;;  %s1427_s10 = int_to_ptr.vmem [resolvable:$true] %s1426_s10 }
  0x40   :  { %193 = vmatpush1.bf16.msra.mxu0 %v1654_v21  ;;  %440 = vmatpush1.bf16.msra.mxu1 %v1675_v30  ;;  %v88_v19 = vld [vmem:[%s2062_s2] sm:$0x3]  ;;  %s1926_s11 = scalar_lea.vmem %s1427_s10, 256  ;;  %p1931_p2 = scmp.lt.s32.totalorder %s1427_s10, %s1427_s10 }
  0x41   :  { %194 = vmatprep.subr.bf16.mxu0 %v1655_v23  ;;  %441 = vmatprep.subr.bf16.mxu1 %v1676_v32  ;;  %v2022_v16 = vsub.s32 1, %v91_v15  ;;  %v2024_v17 = vsub.s32 0, %v91_v15  ;;  %v1745_v32 = vld [vmem:[#allocation5 + $0x1a0] ss:$8 sps:$4 sm:$0xff]   ;;  %p1927_p1 = scmp.ne.s32.totalorder %s1427_s10, %s1926_s11  ;;  %p1932_p3 = scmp.lt.s32.totalorder %s1926_s11, %s1926_s11 }
  0x43   :  { %v97_v21 = vrot.slane %v88_v19, %v2022_v16  ;;  %v93_v22 = vrot.slane %v88_v19, %v2024_v17  ;;  %v1793_v19 = vld [vmem:[#allocation5 + $0x2a0] ss:$8 sps:$4 sm:$0xff]   ;;  %p1933_p4 = por %p1932_p3, %p1931_p2 }
  0x44   :  { %195 = vmatpush1.bf16.msra.mxu0 %v1657_v25  ;;  %442 = vmatpush1.bf16.msra.mxu1 %v1678_v33  ;;  %v1750_v33 = vld [vmem:[#allocation5 + $0x194] ss:$8 sps:$4 sm:$0xff]  }
  0x45   :  { %443 = vmatprep.subr.bf16.mxu1 %v1679_v34  ;;  %684 = vmatprep.subr.bf16.mxu0 %v1708_v53  ;;  %v1748_v34 = vld [vmem:[#allocation5 + $0x190] ss:$8 sps:$4 sm:$0xff]   ;;  %v1780_v53 = vld [vmem:[#allocation5 + $0x2f4] ss:$8 sps:$4 sm:$0xff]   ;;  %p1934_p5 = pnand %p1933_p4, %p1927_p1 }
  0x47   :  { %213 = vmatmul.mubr.bf16.vlgmr.msra.gmra.mxu0 %v71_v31  ;;  %v1747_v31 = vld [vmem:[#allocation5 + $0x1a4] ss:$8 sps:$4 sm:$0xff]  }
  0x48   :  { %444 = vmatpush1.bf16.msra.mxu1 %v1681_v35  ;;  %685 = vmatpush1.bf16.msra.mxu0 %v1706_v52  ;;  %v1753_v35 = vld [vmem:[#allocation5 + $0x184] ss:$8 sps:$4 sm:$0xff]   ;;  %v1775_v52 = vld [vmem:[#allocation5 + $0x200] ss:$8 sps:$4 sm:$0xff]  }
  0x49   :  { %445 = vmatprep.subr.bf16.mxu1 %v1682_v36  ;;  %686 = vmatprep.subr.bf16.mxu0 %v1711_v54  ;;  %v1751_v36 = vld [vmem:[#allocation5 + $0x180] ss:$8 sps:$4 sm:$0xff]   ;;  %v1778_v54 = vld [vmem:[#allocation5 + $0x2f0] ss:$8 sps:$4 sm:$0xff]  }
  0x4c   :  { %446 = vmatpush2.bf16.msra.mxu1 %v1684_v37  ;;  %687 = vmatpush1.bf16.msra.mxu0 %v1709_v55  ;;  %v1754_v37 = vld [vmem:[#allocation5 + $0x270] ss:$8 sps:$4 sm:$0xff]   ;;  %v1783_v55 = vld [vmem:[#allocation5 + $0x2e4] ss:$8 sps:$4 sm:$0xff]  }
  0x4d   :  { %447 = vmatprep.subr.bf16.mxu1 %v1685_v38  ;;  %688 = vmatprep.subr.bf16.mxu0 %v1714_v56  ;;  %v1756_v38 = vld [vmem:[#allocation5 + $0x274] ss:$8 sps:$4 sm:$0xff]   ;;  %v1781_v56 = vld [vmem:[#allocation5 + $0x2e0] ss:$8 sps:$4 sm:$0xff]  }
  0x50   :  { %448 = vmatpush2.bf16.msra.mxu1 %v1687_v39  ;;  %689 = vmatpush1.bf16.msra.mxu0 %v1712_v57  ;;  %v1759_v39 = vld [vmem:[#allocation5 + $0x264] ss:$8 sps:$4 sm:$0xff]   ;;  %v1786_v57 = vld [vmem:[#allocation5 + $0x2d4] ss:$8 sps:$4 sm:$0xff]  }
  0x51   :  { %449 = vmatprep.subr.bf16.mxu1 %v1688_v40  ;;  %690 = vmatprep.subr.bf16.mxu0 %v1717_v58  ;;  %v1757_v40 = vld [vmem:[#allocation5 + $0x260] ss:$8 sps:$4 sm:$0xff]   ;;  %v1784_v58 = vld [vmem:[#allocation5 + $0x2d0] ss:$8 sps:$4 sm:$0xff]  }
  0x54   :  { %450 = vmatpush2.bf16.msra.mxu1 %v1690_v41  ;;  %691 = vmatpush1.bf16.msra.mxu0 %v1715_v59  ;;  %v1762_v41 = vld [vmem:[#allocation5 + $0x254] ss:$8 sps:$4 sm:$0xff]   ;;  %v1789_v59 = vld [vmem:[#allocation5 + $0x2c4] ss:$8 sps:$4 sm:$0xff]  }
  0x55   :  { %451 = vmatprep.subr.bf16.mxu1 %v1691_v42  ;;  %692 = vmatprep.subr.bf16.mxu0 %v1720_v60  ;;  %v1760_v42 = vld [vmem:[#allocation5 + $0x250] ss:$8 sps:$4 sm:$0xff]   ;;  %v1787_v60 = vld [vmem:[#allocation5 + $0x2c0] ss:$8 sps:$4 sm:$0xff]  }
  0x58   :  { %452 = vmatpush2.bf16.msra.mxu1 %v1693_v43  ;;  %693 = vmatpush1.bf16.msra.mxu0 %v1718_v61  ;;  %v1765_v43 = vld [vmem:[#allocation5 + $0x244] ss:$8 sps:$4 sm:$0xff]   ;;  %v1792_v61 = vld [vmem:[#allocation5 + $0x2b4] ss:$8 sps:$4 sm:$0xff]  }
  0x59   :  { %453 = vmatprep.subr.bf16.mxu1 %v1694_v44  ;;  %694 = vmatprep.subr.bf16.mxu0 %v1723_v62  ;;  %v1763_v44 = vld [vmem:[#allocation5 + $0x240] ss:$8 sps:$4 sm:$0xff]   ;;  %v1790_v62 = vld [vmem:[#allocation5 + $0x2b0] ss:$8 sps:$4 sm:$0xff]  }
  0x5c   :  { %454 = vmatpush2.bf16.msra.mxu1 %v1696_v45  ;;  %695 = vmatpush1.bf16.msra.mxu0 %v1721_v63  ;;  %v1768_v45 = vld [vmem:[#allocation5 + $0x234] ss:$8 sps:$4 sm:$0xff]   ;;  %v257_v63 = vld [vmem:[%s2064_s4] sm:$0x3] }
  0x5d   :  { %455 = vmatprep.subr.bf16.mxu1 %v1697_v46  ;;  %696 = vmatprep.subr.bf16.mxu0 %v1726_v0  ;;  %v1766_v46 = vld [vmem:[#allocation5 + $0x230] ss:$8 sps:$4 sm:$0xff]  }
  0x60   :  { %456 = vmatpush2.bf16.msra.mxu1 %v1699_v47  ;;  %697 = vmatpush1.bf16.msra.mxu0 %v1724_v1  ;;  %v1771_v47 = vld [vmem:[#allocation5 + $0x224] ss:$8 sps:$4 sm:$0xff]   ;;  %v266_v1 = vrot.slane %v257_v63, %v2022_v16 }
  0x61   :  { %457 = vmatprep.subr.bf16.mxu1 %v1700_v48  ;;  %698 = vmatprep.subr.bf16.mxu0 %v1729_v2  ;;  %v1769_v48 = vld [vmem:[#allocation5 + $0x220] ss:$8 sps:$4 sm:$0xff]   ;;  %v262_v2 = vrot.slane %v257_v63, %v2024_v17 }
  0x64   :  { %458 = vmatpush2.bf16.msra.mxu1 %v1702_v49  ;;  %699 = vmatpush1.bf16.msra.mxu0 %v1727_v3  ;;  %v1774_v49 = vld [vmem:[#allocation5 + $0x214] ss:$8 sps:$4 sm:$0xff]  }
  0x65   :  { %459 = vmatprep.subr.bf16.mxu1 %v1703_v50  ;;  %700 = vmatprep.subr.bf16.mxu0 %v1732_v4  ;;  %v1772_v50 = vld [vmem:[#allocation5 + $0x210] ss:$8 sps:$4 sm:$0xff]  }
  0x68   :  { %460 = vmatpush2.bf16.msra.mxu1 %v1705_v51  ;;  %701 = vmatpush2.bf16.msra.mxu0 %v1730_v5  ;;  %v1777_v51 = vld [vmem:[#allocation5 + $0x204] ss:$8 sps:$4 sm:$0xff]  }
  0x69   :  { %702 = vmatprep.subr.bf16.mxu0 %v1735_v6  ;;  %939 = vmatprep.subr.bf16.mxu1 %v1756_v38  ;;  %v1825_v38 = vld [vmem:[#allocation5 + $0x304] ss:$8 sps:$4 sm:$0xff]  }
  0x6c   :  { %703 = vmatpush2.bf16.msra.mxu0 %v1733_v7 }
  0x6d   :  { %704 = vmatprep.subr.bf16.mxu0 %v1738_v8 }
  0x70   :  { %705 = vmatpush2.bf16.msra.mxu0 %v1736_v9 }
  0x71   :  { %706 = vmatprep.subr.bf16.mxu0 %v1741_v10 }
  0x74   :  { %707 = vmatpush2.bf16.msra.mxu0 %v1739_v11 }
  0x75   :  { %708 = vmatprep.subr.bf16.mxu0 %v1744_v12 }
  0x78   :  { %709 = vmatpush2.bf16.msra.mxu0 %v1742_v13 }
  0x79   :  { %710 = vmatprep.subr.bf16.mxu0 %v1747_v31  ;;  %v1811_v31 = vld [vmem:[#allocation5 + $0x340] ss:$8 sps:$4 sm:$0xff]  }
  0x7c   :  { %711 = vmatpush2.bf16.msra.mxu0 %v1745_v32  ;;  %v1816_v32 = vld [vmem:[#allocation5 + $0x334] ss:$8 sps:$4 sm:$0xff]  }
  0x7d   :  { %712 = vmatprep.subr.bf16.mxu0 %v1750_v33  ;;  %v1814_v33 = vld [vmem:[#allocation5 + $0x330] ss:$8 sps:$4 sm:$0xff]  }
  0x80   :  { %713 = vmatpush2.bf16.msra.mxu0 %v1748_v34  ;;  %v1819_v34 = vld [vmem:[#allocation5 + $0x324] ss:$8 sps:$4 sm:$0xff]  }
  0x81   :  { %714 = vmatprep.subr.bf16.mxu0 %v1753_v35  ;;  %v1817_v35 = vld [vmem:[#allocation5 + $0x320] ss:$8 sps:$4 sm:$0xff]  }
  0x84   :  { %715 = vmatpush2.bf16.msra.mxu0 %v1751_v36  ;;  %v1822_v36 = vld [vmem:[#allocation5 + $0x314] ss:$8 sps:$4 sm:$0xff]  }
 0x107   :  { %v214_v18 = vpop.f32.mrf.mxu0 }
 0x108   :  { %v215_v28 = vadd.f32 %v214_v18, %v93_v22  ;;  %v1795_v18 = vld [vmem:[#allocation5 + $0x2a4] ss:$8 sps:$4 sm:$0xff]  }
 0x109   :  { %v216_v20 = vpop.f32.mrf.mxu0 }
 0x10a   :  { %v217_v26 = vadd.f32 %v216_v20, %v97_v21  ;;  %v1798_v20 = vld [vmem:[#allocation5 + $0x294] ss:$8 sps:$4 sm:$0xff]  }
 0x10b   :  { %v218_v23 = vpop.f32.mrf.mxu0 }
 0x10c   :  { %v219_v24 = vadd.f32 %v218_v23, %v93_v22  ;;  %v1801_v22 = vld [vmem:[#allocation5 + $0x284] ss:$8 sps:$4 sm:$0xff]   ;;  %v1799_v23 = vld [vmem:[#allocation5 + $0x280] ss:$8 sps:$4 sm:$0xff]  }
 0x10d   :  { %v220_v25 = vpop.f32.mrf.mxu0 }
 0x10e   :  { %v221_v27 = vadd.f32 %v220_v25, %v97_v21  ;;  %v223_v30 = vpack.c.bf16 %v219_v24, %v215_v28  ;;  %v1796_v21 = vld [vmem:[#allocation5 + $0x290] ss:$8 sps:$4 sm:$0xff]   ;;  %v1804_v25 = vld [vmem:[#allocation5 + $0x374] ss:$8 sps:$4 sm:$0xff]  }
 0x10f   :  { %v1802_v24 = vld [vmem:[#allocation5 + $0x370] ss:$8 sps:$4 sm:$0xff]   ;;  %1194 = vmatprep.subr.bf16.mxu0 %v1804_v25  ;;  %v1810_v28 = vld [vmem:[#allocation5 + $0x354] ss:$8 sps:$4 sm:$0xff]  }
 0x110   :  { %v224_v29 = vpack.c.bf16 %v221_v27, %v217_v26  ;;  %v1807_v26 = vld [vmem:[#allocation5 + $0x364] ss:$8 sps:$4 sm:$0xff]   ;;  %v1805_v27 = vld [vmem:[#allocation5 + $0x360] ss:$8 sps:$4 sm:$0xff]  }
 0x112   :  { %461 = vmatprep.mubr.bf16.mxu1 %v224_v29  ;;  %v1808_v29 = vld [vmem:[#allocation5 + $0x350] ss:$8 sps:$4 sm:$0xff]  }
 0x113   :  { %462 = vmatmul.mubr.bf16.vlgmr.msra.gmra.mxu1 %v223_v30  ;;  %v1813_v30 = vld [vmem:[#allocation5 + $0x344] ss:$8 sps:$4 sm:$0xff]  }
 0x114   :  { %940 = vmatpush1.bf16.msra.mxu1 %v1754_v37  ;;  %v1820_v37 = vld [vmem:[#allocation5 + $0x310] ss:$8 sps:$4 sm:$0xff]  }
 0x115   :  { %941 = vmatprep.subr.bf16.mxu1 %v1759_v39  ;;  %v1823_v39 = vld [vmem:[#allocation5 + $0x300] ss:$8 sps:$4 sm:$0xff]  }
 0x118   :  { %942 = vmatpush1.bf16.msra.mxu1 %v1757_v40  ;;  %v1828_v40 = vld [vmem:[#allocation5 + $0x3f4] ss:$8 sps:$4 sm:$0xff]  }
 0x119   :  { %943 = vmatprep.subr.bf16.mxu1 %v1762_v41  ;;  %v1826_v41 = vld [vmem:[#allocation5 + $0x3f0] ss:$8 sps:$4 sm:$0xff]  }
 0x11c   :  { %944 = vmatpush1.bf16.msra.mxu1 %v1760_v42  ;;  %v1831_v42 = vld [vmem:[#allocation5 + $0x3e4] ss:$8 sps:$4 sm:$0xff]  }
 0x11d   :  { %945 = vmatprep.subr.bf16.mxu1 %v1765_v43  ;;  %v1829_v43 = vld [vmem:[#allocation5 + $0x3e0] ss:$8 sps:$4 sm:$0xff]  }
 0x120   :  { %946 = vmatpush1.bf16.msra.mxu1 %v1763_v44  ;;  %v1834_v44 = vld [vmem:[#allocation5 + $0x3d4] ss:$8 sps:$4 sm:$0xff]  }
 0x121   :  { %947 = vmatprep.subr.bf16.mxu1 %v1768_v45  ;;  %v1832_v45 = vld [vmem:[#allocation5 + $0x3d0] ss:$8 sps:$4 sm:$0xff]  }
 0x124   :  { %948 = vmatpush1.bf16.msra.mxu1 %v1766_v46  ;;  %v1837_v46 = vld [vmem:[#allocation5 + $0x3c4] ss:$8 sps:$4 sm:$0xff]  }
 0x125   :  { %949 = vmatprep.subr.bf16.mxu1 %v1771_v47  ;;  %v1835_v47 = vld [vmem:[#allocation5 + $0x3c0] ss:$8 sps:$4 sm:$0xff]  }
 0x128   :  { %950 = vmatpush1.bf16.msra.mxu1 %v1769_v48  ;;  %v1840_v48 = vld [vmem:[#allocation5 + $0x3b4] ss:$8 sps:$4 sm:$0xff]  }
 0x129   :  { %951 = vmatprep.subr.bf16.mxu1 %v1774_v49  ;;  %v1838_v49 = vld [vmem:[#allocation5 + $0x3b0] ss:$8 sps:$4 sm:$0xff]  }
 0x12c   :  { %952 = vmatpush1.bf16.msra.mxu1 %v1772_v50  ;;  %v1487_v50 = vld [vmem:[%s2064_s4 + $0x2] sm:$0x3] }
 0x12d   :  { %953 = vmatprep.subr.bf16.mxu1 %v1777_v51 }
 0x130   :  { %954 = vmatpush1.bf16.msra.mxu1 %v1775_v52  ;;  %v521_v52 = vrot.slane %v1487_v50, %v2022_v16 }
 0x131   :  { %955 = vmatprep.subr.bf16.mxu1 %v1780_v53  ;;  %v517_v53 = vrot.slane %v1487_v50, %v2024_v17 }
 0x134   :  { %956 = vmatpush2.bf16.msra.mxu1 %v1778_v54 }
 0x135   :  { %957 = vmatprep.subr.bf16.mxu1 %v1783_v55 }
 0x138   :  { %958 = vmatpush2.bf16.msra.mxu1 %v1781_v56 }
 0x139   :  { %959 = vmatprep.subr.bf16.mxu1 %v1786_v57 }
 0x13c   :  { %960 = vmatpush2.bf16.msra.mxu1 %v1784_v58 }
 0x13d   :  { %961 = vmatprep.subr.bf16.mxu1 %v1789_v59 }
 0x140   :  { %962 = vmatpush2.bf16.msra.mxu1 %v1787_v60 }
 0x141   :  { %963 = vmatprep.subr.bf16.mxu1 %v1792_v61 }
 0x144   :  { %964 = vmatpush2.bf16.msra.mxu1 %v1790_v62 }
 0x145   :  { %965 = vmatprep.subr.bf16.mxu1 %v1795_v18  ;;  %v1857_v18 = vld [vmem:[#allocation7 + $0x20] sm:$0xff]  }
 0x148   :  { %966 = vmatpush2.bf16.msra.mxu1 %v1793_v19  ;;  %v1858_v19 = vld [vmem:[#allocation7 + $0x58] sm:$0xff]  }
 0x149   :  { %967 = vmatprep.subr.bf16.mxu1 %v1798_v20  ;;  %v1859_v20 = vld [vmem:[#allocation7 + $0x18] sm:$0xff]  }
 0x14c   :  { %968 = vmatpush2.bf16.msra.mxu1 %v1796_v21  ;;  %v1520_v21 = vld [vmem:[%s2064_s4 + $0x4] sm:$0x3] }
 0x14d   :  { %969 = vmatprep.subr.bf16.mxu1 %v1801_v22 }
 0x150   :  { %970 = vmatpush2.bf16.msra.mxu1 %v1799_v23  ;;  %v776_v23 = vrot.slane %v1520_v21, %v2022_v16 }
 0x1d3   :  { %v463_v0 = vpop.f32.mrf.mxu1 }
 0x1d4   :  { %v464_v7 = vadd.f32 %v463_v0, %v262_v2 }
 0x1d5   :  { %v465_v3 = vpop.f32.mrf.mxu1 }
 0x1d6   :  { %v466_v5 = vadd.f32 %v465_v3, %v266_v1  ;;  %v472_v13 = vmax.f32 %v464_v7, 0.0  ;;  %v1843_v3 = vld [vmem:[#allocation5 + $0x3a4] ss:$8 sps:$4 sm:$0xff]  }
 0x1d7   :  { %v467_v4 = vpop.f32.mrf.mxu1  ;;  %v1849_v7 = vld [vmem:[#allocation5 + $0x384] ss:$8 sps:$4 sm:$0xff]  }
 0x1d8   :  { %v468_v6 = vadd.f32 %v467_v4, %v262_v2  ;;  %v473_v11 = vmax.f32 %v466_v5, 0.0  ;;  %v1841_v4 = vld [vmem:[#allocation5 + $0x3a0] ss:$8 sps:$4 sm:$0xff]   ;;  %v1846_v5 = vld [vmem:[#allocation5 + $0x394] ss:$8 sps:$4 sm:$0xff]  }
 0x1d9   :  { %v469_v8 = vpop.f32.mrf.mxu1 }
 0x1da   :  { %v470_v9 = vadd.f32 %v469_v8, %v266_v1  ;;  %v474_v10 = vmax.f32 %v468_v6, 0.0  ;;  %v1844_v6 = vld [vmem:[#allocation5 + $0x390] ss:$8 sps:$4 sm:$0xff]   ;;  %v1847_v8 = vld [vmem:[#allocation5 + $0x380] ss:$8 sps:$4 sm:$0xff]  }
 0x1dc   :  { %v475_v12 = vmax.f32 %v470_v9, 0.0  ;;  %v476_v15 = vpack.c.bf16 %v474_v10, %v472_v13  ;;  %v1850_v9 = vld [vmem:[#allocation7 + $0x78] sm:$0xff]   ;;  %v1854_v13 = vld [vmem:[#allocation7 + $0x68] sm:$0xff]  }
 0x1dd   :  { %v1851_v10 = vld [vmem:[#allocation7 + $0x38] sm:$0xff]   ;;  %1603 = vmatprep.subr.bf16.mxu1 %v1850_v9 }
 0x1de   :  { %v477_v14 = vpack.c.bf16 %v475_v12, %v473_v11  ;;  %v1852_v11 = vld [vmem:[#allocation7 + $0x70] sm:$0xff]  }
 0x1df   :  { %v1853_v12 = vld [vmem:[#allocation7 + $0x30] sm:$0xff]  }
 0x1e0   :  { %716 = vmatprep.mubr.bf16.mxu0 %v477_v14  ;;  %v1855_v14 = vld [vmem:[#allocation7 + $0x28] sm:$0xff]  }
 0x1e1   :  { %717 = vmatmul.mubr.bf16.vlgmr.msra.gmra.mxu0 %v476_v15  ;;  %v1856_v15 = vld [vmem:[#allocation7 + $0x60] sm:$0xff]  }
 0x1e2   :  { %1195 = vmatpush1.bf16.msra.mxu0 %v1802_v24  ;;  %v772_v24 = vrot.slane %v1520_v21, %v2024_v17 }
 0x1e3   :  { %1196 = vmatprep.subr.bf16.mxu0 %v1807_v26 }
 0x1e6   :  { %1197 = vmatpush1.bf16.msra.mxu0 %v1805_v27 }
 0x1e7   :  { %1198 = vmatprep.subr.bf16.mxu0 %v1810_v28 }
 0x1ea   :  { %1199 = vmatpush1.bf16.msra.mxu0 %v1808_v29 }
 0x1eb   :  { %1200 = vmatprep.subr.bf16.mxu0 %v1813_v30 }
 0x1ee   :  { %1201 = vmatpush1.bf16.msra.mxu0 %v1811_v31 }
 0x1ef   :  { %1202 = vmatprep.subr.bf16.mxu0 %v1816_v32 }
 0x1f2   :  { %1203 = vmatpush1.bf16.msra.mxu0 %v1814_v33 }
 0x1f3   :  { %1204 = vmatprep.subr.bf16.mxu0 %v1819_v34 }
 0x1f6   :  { %1205 = vmatpush1.bf16.msra.mxu0 %v1817_v35 }
 0x1f7   :  { %1206 = vmatprep.subr.bf16.mxu0 %v1822_v36 }
 0x1fa   :  { %1207 = vmatpush1.bf16.msra.mxu0 %v1820_v37 }
 0x1fb   :  { %1208 = vmatprep.subr.bf16.mxu0 %v1825_v38  ;;  %v1860_v38 = vld [vmem:[#allocation7 + $0x50] sm:$0xff]  }
 0x1fe   :  { %1209 = vmatpush1.bf16.msra.mxu0 %v1823_v39  ;;  %v1861_v39 = vld [vmem:[#allocation7 + $0x10] sm:$0xff]  }
 0x1ff   :  { %1210 = vmatprep.subr.bf16.mxu0 %v1828_v40  ;;  %v1862_v40 = vld [vmem:[#allocation7 + $0x48] sm:$0xff]  }
 0x202   :  { %1211 = vmatpush2.bf16.msra.mxu0 %v1826_v41  ;;  %v1863_v41 = vld [vmem:[#allocation7 + $0x8] sm:$0xff]  }
 0x203   :  { %1212 = vmatprep.subr.bf16.mxu0 %v1831_v42  ;;  %v1864_v42 = vld [vmem:[#allocation7 + $0x40] sm:$0xff]  }
 0x206   :  { %1213 = vmatpush2.bf16.msra.mxu0 %v1829_v43  ;;  %v1865_v43 = vld [vmem:[#allocation7] sm:$0xff]  }
 0x207   :  { %1214 = vmatprep.subr.bf16.mxu0 %v1834_v44  ;;  %v1553_v44 = vld [vmem:[%s2064_s4 + $0x6] sm:$0x3] }
 0x20a   :  { %1215 = vmatpush2.bf16.msra.mxu0 %v1832_v45 }
 0x20b   :  { %1216 = vmatprep.subr.bf16.mxu0 %v1837_v46  ;;  %v1031_v46 = vrot.slane %v1553_v44, %v2022_v16  ;;  %v1586_v16 = vld [vmem:[%s2066_s6] ss:$0 sm:$0xff] }
 0x20e   :  { %1217 = vmatpush2.bf16.msra.mxu0 %v1835_v47  ;;  %v1027_v47 = vrot.slane %v1553_v44, %v2024_v17 }
 0x20f   :  { %1218 = vmatprep.subr.bf16.mxu0 %v1840_v48 }
 0x212   :  { %1219 = vmatpush2.bf16.msra.mxu0 %v1838_v49 }
 0x213   :  { %1220 = vmatprep.subr.bf16.mxu0 %v1843_v3 }
 0x216   :  { %1221 = vmatpush2.bf16.msra.mxu0 %v1841_v4 }
 0x217   :  { %1222 = vmatprep.subr.bf16.mxu0 %v1846_v5 }
 0x21a   :  { %1223 = vmatpush2.bf16.msra.mxu0 %v1844_v6 }
 0x21b   :  { %1224 = vmatprep.subr.bf16.mxu0 %v1849_v7 }
 0x21e   :  { %1225 = vmatpush2.bf16.msra.mxu0 %v1847_v8 }
 0x2a1   :  { %v718_v51 = vpop.f32.mrf.mxu0 }
 0x2a2   :  { %v719_v58 = vadd.f32 %v718_v51, %v517_v53 }
 0x2a3   :  { %v720_v54 = vpop.f32.mrf.mxu0 }
 0x2a4   :  { %v721_v56 = vadd.f32 %v720_v54, %v521_v52  ;;  %v727_v0 = vmax.f32 %v719_v58, 0.0 }
 0x2a5   :  { %v722_v55 = vpop.f32.mrf.mxu0 }
 0x2a6   :  { %v723_v57 = vadd.f32 %v722_v55, %v517_v53  ;;  %v728_v62 = vmax.f32 %v721_v56, 0.0 }
 0x2a7   :  { %v724_v59 = vpop.f32.mrf.mxu0 }
 0x2a8   :  { %v725_v60 = vadd.f32 %v724_v59, %v521_v52  ;;  %v729_v61 = vmax.f32 %v723_v57, 0.0 }
 0x2aa   :  { %v730_v63 = vmax.f32 %v725_v60, 0.0  ;;  %v731_v2 = vpack.c.bf16 %v729_v61, %v727_v0 }
 0x2ac   :  { %v732_v1 = vpack.c.bf16 %v730_v63, %v728_v62 }
 0x2ae   :  { %971 = vmatprep.mubr.bf16.mxu1 %v732_v1 }
 0x2af   :  { %972 = vmatmul.mubr.bf16.vlgmr.msra.gmra.mxu1 %v731_v2 }
 0x2b0   :  { %1604 = vmatpush3.bf16.msra.mxu1 %v1851_v10 }
 0x2b1   :  { %1605 = vmatprep.subr.bf16.mxu1 %v1852_v11 }
 0x2b4   :  { %1606 = vmatpush3.bf16.msra.mxu1 %v1853_v12 }
 0x2b5   :  { %1607 = vmatprep.subr.bf16.mxu1 %v1854_v13 }
 0x2b8   :  { %1608 = vmatpush3.bf16.msra.mxu1 %v1855_v14 }
 0x2b9   :  { %1609 = vmatprep.subr.bf16.mxu1 %v1856_v15 }
 0x2bc   :  { %1610 = vmatpush3.bf16.msra.mxu1 %v1857_v18 }
 0x2bd   :  { %1611 = vmatprep.subr.bf16.mxu1 %v1858_v19 }
 0x2c0   :  { %1612 = vmatpush3.bf16.msra.mxu1 %v1859_v20 }
 0x2c1   :  { %1613 = vmatprep.subr.bf16.mxu1 %v1860_v38 }
 0x2c4   :  { %1614 = vmatpush3.bf16.msra.mxu1 %v1861_v39 }
 0x2c5   :  { %1615 = vmatprep.subr.bf16.mxu1 %v1862_v40 }
 0x2c8   :  { %1616 = vmatpush3.bf16.msra.mxu1 %v1863_v41 }
 0x2c9   :  { %1617 = vmatprep.subr.bf16.mxu1 %v1864_v42 }
 0x2cc   :  { %1618 = vmatpush3.bf16.msra.mxu1 %v1865_v43 }
 0x36f   :  { %v973_v22 = vpop.f32.mrf.mxu1 }
 0x370   :  { %v974_v29 = vadd.f32 %v973_v22, %v772_v24 }
 0x371   :  { %v975_v25 = vpop.f32.mrf.mxu1 }
 0x372   :  { %v976_v27 = vadd.f32 %v975_v25, %v776_v23  ;;  %v982_v35 = vmax.f32 %v974_v29, 0.0 }
 0x373   :  { %v977_v26 = vpop.f32.mrf.mxu1 }
 0x374   :  { %v978_v28 = vadd.f32 %v977_v26, %v772_v24  ;;  %v983_v33 = vmax.f32 %v976_v27, 0.0 }
 0x375   :  { %v979_v30 = vpop.f32.mrf.mxu1 }
 0x376   :  { %v980_v31 = vadd.f32 %v979_v30, %v776_v23  ;;  %v984_v32 = vmax.f32 %v978_v28, 0.0 }
 0x378   :  { %v985_v34 = vmax.f32 %v980_v31, 0.0  ;;  %v986_v37 = vpack.c.bf16 %v984_v32, %v982_v35 }
 0x37a   :  { %v987_v36 = vpack.c.bf16 %v985_v34, %v983_v33 }
 0x37c   :  { %1226 = vmatprep.mubr.bf16.mxu0 %v987_v36 }
 0x37d   :  { %1227 = vmatmul.mubr.bf16.vlgmr.msra.gmra.mxu0 %v986_v37 }
 0x43d   :  { %v1228_v45 = vpop.f32.mrf.mxu0 }
 0x43e   :  { %v1229_v52 = vadd.f32 %v1228_v45, %v1027_v47 }
 0x43f   :  { %v1230_v48 = vpop.f32.mrf.mxu0 }
 0x440   :  { %v1231_v50 = vadd.f32 %v1230_v48, %v1031_v46  ;;  %v1237_v58 = vmax.f32 %v1229_v52, 0.0 }
 0x441   :  { %v1232_v49 = vpop.f32.mrf.mxu0 }
 0x442   :  { %v1233_v51 = vadd.f32 %v1232_v49, %v1027_v47  ;;  %v1238_v56 = vmax.f32 %v1231_v50, 0.0 }
 0x443   :  { %v1234_v53 = vpop.f32.mrf.mxu0 }
 0x444   :  { %v1235_v54 = vadd.f32 %v1234_v53, %v1031_v46  ;;  %v1239_v55 = vmax.f32 %v1233_v51, 0.0 }
 0x446   :  { %v1240_v57 = vmax.f32 %v1235_v54, 0.0  ;;  %v1241_v60 = vpack.c.bf16 %v1239_v55, %v1237_v58 }
 0x448   :  { %v1242_v59 = vpack.c.bf16 %v1240_v57, %v1238_v56 }
 0x44a   :  { %1410 = vmatprep.mubr.bf16.mxu1 %v1242_v59 }
 0x44b   :  { %1411 = vmatmul.mubr.bf16.vlgmr.msra.gmra.mxu1 %v1241_v60 }
 0x50b   :  { %v1619_v61 = vpop.f32.mrf.mxu1 }
 0x50d   :  { %v1620_v17 = vpop.f32.mrf.mxu1 }
 0x50e   :  { %v1621_v62 = vadd.f32 %v1620_v17, %v1619_v61 }
 0x50f   :  { %v1622_v63 = vpop.f32.mrf.mxu1 }
 0x510   :  { %v1413_v0 = vadd.f32 %v1621_v62, %v1586_v16 }
 0x511   :  { %v1623_v1 = vpop.f32.mrf.mxu1 }
 0x512   :  { %1419 = vst [vmem:[#allocation8] sm:$0xff] %v1413_v0  ;;  %v1624_v2 = vadd.f32 %v1623_v1, %v1622_v63 }
 0x514   :  { %v1416_v3 = vadd.f32 %v1624_v2, %v1586_v16 }
 0x516   :  { %1420 = vst [vmem:[#allocation8 + $0x8] sm:$0xff] %v1416_v3 }
 0x517   :  { %1937 = shalt.err (!%p1934_p5)
}
 0x518   :  { %1432 = dma.vmem_to_hbm [thread:$0]  %s1427_s10, 256, %s2067_s7, [#allocation4], %s1954_s29, %s1954_s29, %s1955_s30  }
 0x519   :  { %1950 = dma.done.wait [#allocation4], 256  }
 0x51a   :  { %1951 = vsyncadd [#allocation4], 4294967040 }
 0x51b   :  { %1436 = vsyncpa [#allocation3], 1 }
 0x51c   :  { %1437 = vsyncpa [#allocation6], 1 }
 0x51d   :  { %1438 = vsyncpa [#allocation4], 1 }

</bundles_post_ra>
